<compile_context>
chip_gen: v7x
topology: tpu7x:2x2x1
jax: 0.10.0
libtpu: 0.0.40
codegen_flags: <defaults>
</compile_context>

<pallas_src>
import math

import jax
import jax.numpy as jnp
from jax.experimental import pallas as pl
from jax.experimental.pallas import tpu as pltpu

_SQRT_HALF = 0.7071067811865476
_LANE = 128
_SUBLANE = 8


def _round_up(n, m):
    return ((n + m - 1) // m) * m


def _cdiv(a, b):
    return -(-a // b)


# ----------------------------- in-kernel math ---------------------------------

def _gelu_exact(x):
    """0.5*x*(1+erf(x/sqrt(2))) with Abramowitz&Stegun 7.1.26 erf (|err|<=1.5e-7).

    VALU-lean: the divide is routed through pl.reciprocal (EUP slot), exp is
    EUP, and the sign handling is a single select instead of sign/mul.
    """
    a1, a2, a3, a4, a5 = (0.254829592, -0.284496736, 1.421413741,
                          -1.453152027, 1.061405429)
    p = 0.3275911
    u = x * _SQRT_HALF
    au = jnp.abs(u)
    t = pl.reciprocal(1.0 + p * au)            # exact reciprocal on the EUP
    poly = ((((a5 * t + a4) * t + a3) * t + a2) * t + a1) * t
    q = poly * jnp.exp(-au * au)               # exp on the EUP
    one_plus_erf = jnp.where(u >= 0, 2.0 - q, q)   # 1 + erf(u)
    return 0.5 * x * one_plus_erf


# ----------------------------- kernels -----------------------------------------

def _ffn_resident_kernel(x_ref, w1_ref, b1_ref, w2_ref, b2_ref, o_ref):
    # Weight-resident fast path: grid = (M tiles,). W1/W2/b1/b2 stay in VMEM
    # across the whole call (constant index_map); no accumulator, no reduction.
    cdt = w1_ref.dtype                                       # bf16 or f32
    x = x_ref[...].astype(cdt)
    h = jnp.dot(x, w1_ref[...], preferred_element_type=jnp.float32)
    h = _gelu_exact(h + b1_ref[...]).astype(cdt)
    y = jnp.dot(h, w2_ref[...], preferred_element_type=jnp.float32)
    o_ref[...] = (y + b2_ref[...]).astype(o_ref.dtype)


def _ffn_tiled_kernel(x_ref, w1_ref, b1_ref, w2_ref, b2_ref, o_ref, acc_ref):
    # Fallback for large hidden dims: hidden tiles stream along axis j
    # ("arbitrary"); the second matmul accumulates in an f32 scratch. The
    # finalize is fused with the last partial product and b2 is added once.
    j = pl.program_id(1)
    nj = pl.num_programs(1)

    @pl.when(j == 0)
    def _():
        acc_ref[...] = jnp.zeros_like(acc_ref)

    cdt = w1_ref.dtype
    x = x_ref[...].astype(cdt)
    h = jnp.dot(x, w1_ref[...], preferred_element_type=jnp.float32)
    h = _gelu_exact(h + b1_ref[...]).astype(cdt)
    contrib = jnp.dot(h, w2_ref[...], preferred_element_type=jnp.float32)

    @pl.when(j < nj - 1)
    def _():
        acc_ref[...] += contrib

    @pl.when(j == nj - 1)
    def _():
        o_ref[...] = (acc_ref[...] + contrib + b2_ref[...]).astype(o_ref.dtype)


# ----------------------------- VMEM-aware tiling --------------------------------

def _vmem_capacity_bytes():
    try:
        info = pltpu.get_tpu_info()
        cap = getattr(info, "vmem_capacity_bytes", None)
        if cap:
            return int(cap)
    except Exception:
        pass
    return 64 * 1024 * 1024        # conservative: v7x per-TensorCore VMEM


def _pick_m_tile(m, per_row_bytes, row_budget_bytes):
    tm = min(row_budget_bytes // max(per_row_bytes, 1), 2048)
    tm = max((int(tm) // _SUBLANE) * _SUBLANE, _SUBLANE)
    if tm >= m:
        # Whole problem fits one tile; split into two tiles when M is big
        # enough so the "parallel" axis can span both v7x TensorCores.
        if m >= 2 * _SUBLANE:
            tm = _round_up(_cdiv(m, 2), _SUBLANE)
        else:
            tm = _round_up(m, _SUBLANE)
    return tm


def _pick_h_tile(hp, d, dp, w_itemsize, budget):
    # Prefer 256/512-multiples (keeps the v6e/v7x 2x256x256 MXU full) subject
    # to the VMEM budget; hp is always a multiple of 128 after padding.
    for c in (512, 256, 128):
        if hp % c == 0:
            tile_bytes = 2 * (d * c + c * dp) * w_itemsize + 2 * (c + dp) * 4
            if tile_bytes <= budget // 2:
                return c
    return 128 if hp % 128 == 0 else hp


# ----------------------------- module forward -----------------------------------

def feedforward_forward(x, kparams, *, force_tiled=False):
    """FeedForward forward pass. x: [..., dim] -> [..., dim].

    kparams comes from prepare_kernel_params (pre-transposed, zero-padded to
    lane multiples, optionally bf16) — done once at parameter-setup time.
    """
    orig_shape = x.shape
    D = orig_shape[-1]
    M = math.prod(orig_shape[:-1])

    w1_t, b1 = kparams["w1_t"], kparams["b1"]      # [D, Hp], [1, Hp] (f32)
    w2_t, b2 = kparams["w2_t"], kparams["b2"]      # [Hp, Dp], [1, Dp] (f32)
    assert kparams["dim"] == D and w1_t.shape[0] == D
    Hp, Dp = w2_t.shape
    ws = jnp.dtype(w1_t.dtype).itemsize
    xs = jnp.dtype(x.dtype).itemsize

    cap = _vmem_capacity_bytes()
    budget = int(cap * 0.70)                       # tile-sizing budget
    vmem_limit = min(int(cap * 0.85), 100 * 1024 * 1024)

    x2d = x.reshape(M, D)

    # Resident fast path if both (padded) weights + biases fit comfortably.
    weight_bytes = 2 * (D * Hp + Hp * Dp) * ws + 2 * (Hp + Dp) * 4
    use_resident = (not force_tiled) and (weight_bytes <= budget // 2)

    if use_resident:
        per_row = 2 * D * xs + 2 * Dp * xs + Hp * (4 + ws) + Dp * 4
        tm = _pick_m_tile(M, per_row, max(budget - weight_bytes, per_row * _SUBLANE))
    else:
        th = _pick_h_tile(Hp, D, Dp, ws, budget)
        tile_w_bytes = 2 * (D * th + th * Dp) * ws + 2 * (th + Dp) * 4
        per_row = 2 * D * xs + 2 * Dp * xs + 2 * Dp * 4 + th * (4 + ws)
        tm = _pick_m_tile(M, per_row, max(budget - tile_w_bytes, per_row * _SUBLANE))

    m_tiles = _cdiv(M, tm)
    M_pad = m_tiles * tm
    if M_pad != M:
        x2d = jnp.pad(x2d, ((0, M_pad - M), (0, 0)))

    if use_resident:
        out = pl.pallas_call(
            _ffn_resident_kernel,
            out_shape=jax.ShapeDtypeStruct((M_pad, Dp), x.dtype),
            grid_spec=pltpu.PrefetchScalarGridSpec(
                num_scalar_prefetch=0,
                grid=(m_tiles,),
                in_specs=[
                    pl.BlockSpec((tm, D), lambda i: (i, 0)),    # x M-tile
                    pl.BlockSpec((D, Hp), lambda i: (0, 0)),    # W1 (resident)
                    pl.BlockSpec((1, Hp), lambda i: (0, 0)),    # b1 (resident)
                    pl.BlockSpec((Hp, Dp), lambda i: (0, 0)),   # W2 (resident)
                    pl.BlockSpec((1, Dp), lambda i: (0, 0)),    # b2 (resident)
                ],
                out_specs=pl.BlockSpec((tm, Dp), lambda i: (i, 0)),
            ),
            compiler_params=pltpu.CompilerParams(
                dimension_semantics=("parallel",),
                vmem_limit_bytes=vmem_limit,
            ),
        )(x2d, w1_t, b1, w2_t, b2)
    else:
        out = pl.pallas_call(
            _ffn_tiled_kernel,
            out_shape=jax.ShapeDtypeStruct((M_pad, Dp), x.dtype),
            grid_spec=pltpu.PrefetchScalarGridSpec(
                num_scalar_prefetch=0,
                grid=(m_tiles, Hp // th),
                in_specs=[
                    pl.BlockSpec((tm, D), lambda i, j: (i, 0)),   # x (resident over j)
                    pl.BlockSpec((D, th), lambda i, j: (0, j)),   # W1 hidden tile
                    pl.BlockSpec((1, th), lambda i, j: (0, j)),   # b1 hidden tile
                    pl.BlockSpec((th, Dp), lambda i, j: (j, 0)),  # W2 hidden tile
                    pl.BlockSpec((1, Dp), lambda i, j: (0, 0)),   # b2 (resident)
                ],
                out_specs=pl.BlockSpec((tm, Dp), lambda i, j: (i, 0)),
                scratch_shapes=[pltpu.VMEM((tm, Dp), jnp.float32)],
            ),
            compiler_params=pltpu.CompilerParams(
                dimension_semantics=("parallel", "arbitrary"),
                vmem_limit_bytes=vmem_limit,
            ),
        )(x2d, w1_t, b1, w2_t, b2)

    # Dropout(p=0.0) layers are identities -> nothing to do.
    return out[:M, :D].reshape(orig_shape)


# ----------------------------- parameters ---------------------------------------

def make_torch_params(key, dim, hidden_dim, dtype=jnp.float32):
    """PyTorch-layout weights: Linear(dim, hidden_dim) then Linear(hidden_dim, dim)."""
    k1, k2, k3, k4 = jax.random.split(key, 4)
    return {
        "w1": jax.random.normal(k1, (hidden_dim, dim), dtype=dtype) * 0.05,
        "b1": jax.random.normal(k2, (hidden_dim,), dtype=dtype) * 0.05,
        "w2": jax.random.normal(k3, (dim, hidden_dim), dtype=dtype) * 0.05,
        "b2": jax.random.normal(k4, (dim,), dtype=dtype) * 0.05,
    }


def prepare_kernel_params(w1, b1, w2, b2, weight_dtype=None):
    """One-time param prep for the kernel:
      * transpose weights to [K, N] MXU operand layout,
      * zero-pad the hidden and output feature dims to multiples of 128
        (lane-dense stores, full MXU lanes); padded output columns are exactly
        0 and get sliced off in the wrapper (x itself is never padded),
      * optionally cast weights to bf16 (MXU-native); biases stay f32 because
        they are added to f32 accumulators.
    """
    H, D = w1.shape
    weight_dtype = weight_dtype or w1.dtype
    Hp = max(_round_up(H, _LANE), _LANE)
    Dp = max(_round_up(D, _LANE), _LANE)
    w1_t = jnp.zeros((D, Hp), weight_dtype).at[:, :H].set(w1.T.astype(weight_dtype))
    b1p = jnp.zeros((1, Hp), jnp.float32).at[:, :H].set(b1.astype(jnp.float32))
    w2_t = jnp.zeros((Hp, Dp), weight_dtype).at[:H, :D].set(w2.T.astype(weight_dtype))
    b2p = jnp.zeros((1, Dp), jnp.float32).at[:, :D].set(b2.astype(jnp.float32))
    return {"w1_t": w1_t, "b1": b1p, "w2_t": w2_t, "b2": b2p, "dim": D}


# ----------------------------- reference (pure JAX) ------------------------------

def feedforward_reference(x, torch_params):
    h = x @ torch_params["w1"].T + torch_params["b1"]
    h = jax.nn.gelu(h, approximate=False)    # PyTorch nn.GELU() default = exact erf
    return h @ torch_params["w2"].T + torch_params["b2"]


# ----------------------------- main ----------------------------------------------

if __name__ == "__main__":
    key = jax.random.PRNGKey(0)
    kx, kp, kp2 = jax.random.split(key, 3)

    B, N, dim, hidden_dim = 2, 8, 32, 64
    x = jax.random.normal(kx, (B, N, dim), dtype=jnp.float32)

    # --- Test 1: f32 weights, weight-resident fast path, strict tolerance -----
    pt = make_torch_params(kp, dim, hidden_dim)
    ref = feedforward_reference(x, pt)

    kparams_f32 = prepare_kernel_params(pt["w1"], pt["b1"], pt["w2"], pt["b2"])
    out = jax.block_until_ready(feedforward_forward(x, kparams_f32))
    assert out.shape == (B, N, dim)
    assert jnp.allclose(out, ref, atol=2e-4, rtol=2e-4), "f32 resident path mismatch"

    # --- Test 2: bf16 weights (MXU-native operands), looser tolerance ---------
    kparams_bf16 = prepare_kernel_params(pt["w1"], pt["b1"], pt["w2"], pt["b2"],
                                         weight_dtype=jnp.bfloat16)
    out_bf16 = jax.block_until_ready(feedforward_forward(x, kparams_bf16))
    assert out_bf16.shape == (B, N, dim)
    assert jnp.allclose(out_bf16, ref, atol=1e-2, rtol=2e-2), "bf16 path mismatch"

    # --- Test 3: larger hidden dim through the tiled-reduction fallback -------
    hidden_big = 1024
    pt3 = make_torch_params(kp2, dim, hidden_big)
    ref3 = feedforward_reference(x, pt3)
    kparams3 = prepare_kernel_params(pt3["w1"], pt3["b1"], pt3["w2"], pt3["b2"])
    out3 = jax.block_until_ready(feedforward_forward(x, kparams3, force_tiled=True))
    assert out3.shape == (B, N, dim)
    assert jnp.allclose(out3, ref3, atol=1e-3, rtol=1e-3), "tiled fallback mismatch"

    print("KERNEL_OK")
</pallas_src>

<mosaic_0001>
module attributes {stable_mosaic.version = 11 : i64} {
  func.func @_ffn_resident_kernel(%arg0: i32, %arg1: memref<8x32xf32, #tpu.memory_space<vmem>>, %arg2: memref<32x128xf32, #tpu.memory_space<vmem>>, %arg3: memref<1x128xf32, #tpu.memory_space<vmem>>, %arg4: memref<128x128xf32, #tpu.memory_space<vmem>>, %arg5: memref<1x128xf32, #tpu.memory_space<vmem>>, %arg6: memref<8x128xf32, #tpu.memory_space<vmem>>) attributes {dimension_semantics = [#tpu.dimension_semantics<parallel>], iteration_bounds = array<i64: 2>, scalar_prefetch = 0 : i64, scratch_operands = 0 : i64, tpu.core_type = #tpu.core_type<tc>, window_params = [{transform_indices = @transform_0, window_bounds = array<i64: 8, 32>}, {pipeline_mode = #tpu.pipeline_mode<synchronous>, transform_indices = @transform_1, window_bounds = array<i64: 32, 128>}, {pipeline_mode = #tpu.pipeline_mode<synchronous>, transform_indices = @transform_2, window_bounds = array<i64: 1, 128>}, {pipeline_mode = #tpu.pipeline_mode<synchronous>, transform_indices = @transform_3, window_bounds = array<i64: 128, 128>}, {pipeline_mode = #tpu.pipeline_mode<synchronous>, transform_indices = @transform_4, window_bounds = array<i64: 1, 128>}, {transform_indices = @transform_5, window_bounds = array<i64: 8, 128>}]} {
    %c0 = arith.constant 0 : index
    %c0_0 = arith.constant 0 : index
    %0 = vector.load %arg1[%c0, %c0_0] : memref<8x32xf32, #tpu.memory_space<vmem>>, vector<8x32xf32>
    %c0_1 = arith.constant 0 : index
    %c0_2 = arith.constant 0 : index
    %1 = vector.load %arg2[%c0_1, %c0_2] : memref<32x128xf32, #tpu.memory_space<vmem>>, vector<32x128xf32>
    %cst = arith.constant dense<0.000000e+00> : vector<8x128xf32>
    %2 = tpu.matmul %0, %1, %cst {dimension_numbers = #tpu.dot_dimension_numbers<[1], [0], [0], [1], [0, 0, 1, 1], [], []>} : vector<8x32xf32>, vector<32x128xf32>, vector<8x128xf32> -> vector<8x128xf32>
    %c0_3 = arith.constant 0 : index
    %c0_4 = arith.constant 0 : index
    %3 = vector.load %arg3[%c0_3, %c0_4] : memref<1x128xf32, #tpu.memory_space<vmem>>, vector<1x128xf32>
    %4 = vector.broadcast %3 : vector<1x128xf32> to vector<8x128xf32>
    %5 = arith.addf %2, %4 : vector<8x128xf32>
    %cst_5 = arith.constant 0.707106769 : f32
    %6 = vector.broadcast %cst_5 : f32 to vector<8x128xf32>
    %7 = arith.mulf %5, %6 : vector<8x128xf32>
    %8 = math.absf %7 : vector<8x128xf32>
    %cst_6 = arith.constant 0.327591091 : f32
    %9 = vector.broadcast %cst_6 : f32 to vector<8x128xf32>
    %10 = arith.mulf %9, %8 : vector<8x128xf32>
    %cst_7 = arith.constant 1.000000e+00 : f32
    %11 = vector.broadcast %cst_7 : f32 to vector<8x128xf32>
    %12 = arith.addf %11, %10 : vector<8x128xf32>
    %13 = tpu.reciprocal %12 : vector<8x128xf32> -> vector<8x128xf32>
    %cst_8 = arith.constant 1.06140542 : f32
    %14 = vector.broadcast %cst_8 : f32 to vector<8x128xf32>
    %15 = arith.mulf %14, %13 : vector<8x128xf32>
    %cst_9 = arith.constant -1.45315206 : f32
    %16 = vector.broadcast %cst_9 : f32 to vector<8x128xf32>
    %17 = arith.addf %15, %16 : vector<8x128xf32>
    %18 = arith.mulf %17, %13 : vector<8x128xf32>
    %cst_10 = arith.constant 1.42141378 : f32
    %19 = vector.broadcast %cst_10 : f32 to vector<8x128xf32>
    %20 = arith.addf %18, %19 : vector<8x128xf32>
    %21 = arith.mulf %20, %13 : vector<8x128xf32>
    %cst_11 = arith.constant -0.284496725 : f32
    %22 = vector.broadcast %cst_11 : f32 to vector<8x128xf32>
    %23 = arith.addf %21, %22 : vector<8x128xf32>
    %24 = arith.mulf %23, %13 : vector<8x128xf32>
    %cst_12 = arith.constant 0.254829586 : f32
    %25 = vector.broadcast %cst_12 : f32 to vector<8x128xf32>
    %26 = arith.addf %24, %25 : vector<8x128xf32>
    %27 = arith.mulf %26, %13 : vector<8x128xf32>
    %cst_13 = arith.constant 0.000000e+00 : f32
    %28 = vector.broadcast %cst_13 : f32 to vector<8x128xf32>
    %29 = arith.subf %28, %8 : vector<8x128xf32>
    %30 = arith.mulf %29, %8 : vector<8x128xf32>
    %31 = math.exp %30 : vector<8x128xf32>
    %32 = arith.mulf %27, %31 : vector<8x128xf32>
    %cst_14 = arith.constant 0.000000e+00 : f32
    %33 = vector.broadcast %cst_14 : f32 to vector<8x128xf32>
    %34 = arith.cmpf oge, %7, %33 : vector<8x128xf32>
    %cst_15 = arith.constant 2.000000e+00 : f32
    %35 = vector.broadcast %cst_15 : f32 to vector<8x128xf32>
    %36 = arith.subf %35, %32 : vector<8x128xf32>
    %37 = arith.select %34, %36, %32 : vector<8x128xi1>, vector<8x128xf32>
    %cst_16 = arith.constant 5.000000e-01 : f32
    %38 = vector.broadcast %cst_16 : f32 to vector<8x128xf32>
    %39 = arith.mulf %38, %5 : vector<8x128xf32>
    %40 = arith.mulf %39, %37 : vector<8x128xf32>
    %c0_17 = arith.constant 0 : index
    %c0_18 = arith.constant 0 : index
    %41 = vector.load %arg4[%c0_17, %c0_18] : memref<128x128xf32, #tpu.memory_space<vmem>>, vector<128x128xf32>
    %cst_19 = arith.constant dense<0.000000e+00> : vector<8x128xf32>
    %42 = tpu.matmul %40, %41, %cst_19 {dimension_numbers = #tpu.dot_dimension_numbers<[1], [0], [0], [1], [0, 0, 1, 1], [], []>} : vector<8x128xf32>, vector<128x128xf32>, vector<8x128xf32> -> vector<8x128xf32>
    %c0_20 = arith.constant 0 : index
    %c0_21 = arith.constant 0 : index
    %43 = vector.load %arg5[%c0_20, %c0_21] : memref<1x128xf32, #tpu.memory_space<vmem>>, vector<1x128xf32>
    %44 = vector.broadcast %43 : vector<1x128xf32> to vector<8x128xf32>
    %45 = arith.addf %42, %44 : vector<8x128xf32>
    %c0_22 = arith.constant 0 : index
    %c0_23 = arith.constant 0 : index
    %46 = vector.load %arg6[%c0_22, %c0_23] : memref<8x128xf32, #tpu.memory_space<vmem>>, vector<8x128xf32>
    tpu.vector_store %arg6[%c0_22, %c0_23], %45 {strides = array<i32>} : memref<8x128xf32, #tpu.memory_space<vmem>>, vector<8x128xf32>,
    return
  }
  func.func @transform_0(%arg0: i32) -> (i32, i32) {
    %c0_i32 = arith.constant 0 : i32
    %c0_i32_0 = arith.constant 0 : i32
    return %arg0, %c0_i32 : i32, i32
  }
  func.func @transform_1(%arg0: i32) -> (i32, i32) {
    %c0_i32 = arith.constant 0 : i32
    %c0_i32_0 = arith.constant 0 : i32
    %c0_i32_1 = arith.constant 0 : i32
    return %c0_i32, %c0_i32_0 : i32, i32
  }
  func.func @transform_2(%arg0: i32) -> (i32, i32) {
    %c0_i32 = arith.constant 0 : i32
    %c0_i32_0 = arith.constant 0 : i32
    %c0_i32_1 = arith.constant 0 : i32
    return %c0_i32, %c0_i32_0 : i32, i32
  }
  func.func @transform_3(%arg0: i32) -> (i32, i32) {
    %c0_i32 = arith.constant 0 : i32
    %c0_i32_0 = arith.constant 0 : i32
    %c0_i32_1 = arith.constant 0 : i32
    return %c0_i32, %c0_i32_0 : i32, i32
  }
  func.func @transform_4(%arg0: i32) -> (i32, i32) {
    %c0_i32 = arith.constant 0 : i32
    %c0_i32_0 = arith.constant 0 : i32
    %c0_i32_1 = arith.constant 0 : i32
    return %c0_i32, %c0_i32_0 : i32, i32
  }
  func.func @transform_5(%arg0: i32) -> (i32, i32) {
    %c0_i32 = arith.constant 0 : i32
    %c0_i32_0 = arith.constant 0 : i32
    return %arg0, %c0_i32 : i32, i32
  }
}

</mosaic_0001>

<bundles_post_ra>
// kernel: tpu_custom_call.1
= control target key start
LH: loop header
LB: loop body
LE: loop exit
PB: predicated region body
PF: predicated region fallthrough
CT: control target
= control target key end

     0   :  { %10 = vsyncpa [#allocation3], 0  ;;  %s1205_s0 = inlined_call_operand.hbm [shape: f32[16,32], index: 0, kind: input, shape index: {}]   ;;  %s1206_s1 = inlined_call_operand.hbm [shape: f32[32,128], index: 1, kind: input, shape index: {}]   ;;  %s1207_s2 = inlined_call_operand.vmem [shape: f32[1,128], index: 2, kind: input, shape index: {}]   ;;  %s1208_s3 = inlined_call_operand.hbm [shape: f32[128,128], index: 3, kind: input, shape index: {}]   ;;  %s1209_s4 = inlined_call_operand.vmem [shape: f32[1,128], index: 4, kind: input, shape index: {}]   ;;  %s1210_s5 = inlined_call_operand.hbm [shape: f32[16,128], index: 5, kind: output, shape index: {}]  }
   0x1   :  { %12 = vsyncpa [#allocation3 + $0x1], 0 }
   0x2   :  { %13 = vsyncpa [#allocation6], 0 }
   0x3   :  { %14 = vsyncpa [#allocation4], 0 }
   0x4   :  { %16 = vsyncpa [#allocation4 + $0x1], 0  ;;  %s966_s18 = smov 0   ;;  %s968_s19 = smov 0  }
   0x5   :  { %s970_s20 = smov 0   ;;  %s972_s21 = smov 0  }
   0x6 LB: > { %s987_s22 = sadd.s32 4294967295, %s925_s21   ;;  %s576_s23 = sadd.s32 4294967294, %s925_s21   ;;  %s925_s21 = sphi %s972_s21, %s1230_s21   ;;  %s921_s20 = sphi %s970_s20, %s1229_s20   ;;  %s917_s19 = sphi %s968_s19, %s1228_s19   ;;  %s913_s18 = sphi %s966_s18, %s1227_s18  }
   0x7   : > { %p42_p0 = scmp.ne.s32.totalorder %s917_s19, %s913_s18  ;;  %p1211_p1 = scmp.eq.s32.totalorder %s987_s22, 0 }
   0x8   : > { %p156_p3 = scmp.eq.s32.totalorder %s576_s23, 1  ;;  %p577_p5 = scmp.ge.s32.totalorder %s925_s21, 1 }
   0x9   : > { %p996_p4 = por %p1211_p1, %p42_p0  ;;  %p163_p7 = scmp.lt.s32.totalorder %s925_s21, 3 }
   0xa   : > { %p1001_p6 = por %p156_p3, %p42_p0  ;;  %s927_s27 = smov [#allocation5]  }
   0xb   : > { %s1214_s24 = scalar_select %p996_p4, 1, 0 }
   0xc   : > { %s1215_s25 = scalar_select %p1001_p6, 1, 0 }
   0xd   : > { %p1006_p8 = pnand %p577_p5, %p163_p7  ;;  %s175_s28 = sshll.u32 %s927_s27, 4  ;;  %s1010_s28 = int_to_ptr.vmem [resolvable:$true] %s175_s28 }
   0xe   : > { %s928_s30 = smov [#allocation7]   ;;  %s769_s9 = scalar_lea.hbm %s1206_s1, 512 }
   0xf   : > { %p705_p9 = pneg %p1006_p8  ;;  %s191_s6 = sshll.u32 %s928_s30, 4  ;;  %s1021_s6 = int_to_ptr.vmem [resolvable:$true] %s191_s6 }
  0x10   : > { %p770_p12 = scmp.ne.s32.totalorder %s1206_s1, %s769_s9  ;;  %p776_p5 = scmp.lt.u32.totalorder %s769_s9, %s1206_s1 }
  0x11   : > { %p1017_p11 = pnand %p705_p9, %p1211_p1 }
  0x13   : > { %p771_p13 = pneg %p1017_p11 }
  0x15   : > { %p772_p0 = pnand %p771_p13, %p770_p12 }
  0x17   : > { %p773_p3 = pneg %p772_p0 }
  0x19   : > { %p778_p7 = pnand %p776_p5, %p773_p3 }
  0x1b   : > { %781 = shalt.err (!%p778_p7)
}
  0x1c   : > { %s782_s14 = scalar_lea.vmem %s1010_s28, 512  ;;  %p790_p2 = scmp.lt.s32.totalorder %s1010_s28, %s1010_s28 }
  0x1d   : > { %p783_p9 = scmp.ne.s32.totalorder %s1010_s28, %s782_s14  ;;  %p791_p12 = scmp.lt.s32.totalorder %s782_s14, %s782_s14 }
  0x1f   : > { %p785_p10 = pnand %p783_p9, %p771_p13  ;;  %p792_p0 = por %p791_p12, %p790_p2 }
  0x21   : > { %p786_p1 = pneg %p785_p10 }
  0x23   : > { %p793_p6 = pnand %p792_p0, %p786_p1 }
  0x25   : > { %796 = shalt.err (!%p793_p6)
}
  0x26   : > { %s929_s15 = smov 128   ;;  %s930_s16 = smov 8  }
  0x27   : > { %708 = dma.hbm_to_vmem [thread:$0]  (!%p1017_p11), %s1206_s1, 512, %s1010_s28, [#allocation6], %s929_s15, %s929_s15, %s930_s16  }
  0x28   : > { %s797_s7 = scalar_lea.hbm %s1208_s3, 2048 }
  0x29   : > { %p798_p2 = scmp.ne.s32.totalorder %s1208_s3, %s797_s7  ;;  %p804_p10 = scmp.lt.u32.totalorder %s797_s7, %s1208_s3 }
  0x2b   : > { %p800_p1 = pnand %p798_p2, %p771_p13 }
  0x2d   : > { %p801_p6 = pneg %p800_p1 }
  0x2f   : > { %p806_p3 = pnand %p804_p10, %p801_p6 }
  0x31   : > { %809 = shalt.err (!%p806_p3)
}
  0x32   : > { %s810_s28 = scalar_lea.vmem %s1021_s6, 2048  ;;  %p818_p12 = scmp.lt.s32.totalorder %s1021_s6, %s1021_s6 }
  0x33   : > { %p811_p5 = scmp.ne.s32.totalorder %s1021_s6, %s810_s28  ;;  %p819_p0 = scmp.lt.s32.totalorder %s810_s28, %s810_s28 }
  0x35   : > { %p813_p7 = pnand %p811_p5, %p771_p13  ;;  %p820_p2 = por %p819_p0, %p818_p12 }
  0x37   : > { %p814_p9 = pneg %p813_p7 }
  0x39   : > { %p821_p1 = pnand %p820_p2, %p814_p9 }
  0x3b   : > { %824 = shalt.err (!%p821_p1)
}
  0x3c   : > { %711 = dma.hbm_to_vmem [thread:$0]  (!%p1017_p11), %s1208_s3, 2048, %s1021_s6, [#allocation6], %s929_s15, %s929_s15, %s930_s16  }
  0x3d   : > { %s1076_s14 = sadd.s32 1, %s925_s21   ;;  %s29_s29 = sadd.s32 1, %s921_s20 }
  0x3e   : > { %s26_s17 = ssub.s32 %s925_s21, %s1076_s14  ;;  %p36_p13 = scmp.ne.s32.totalorder %s921_s20, %s917_s19 }
  0x3f   : > { %p27_p6 = scmp.eq.s32.totalorder %s26_s17, 0  ;;  %p37_p10 = scmp.eq.s32.totalorder %s925_s21, 0 }
  0x40   : > { %p1218_p3 = scmp.eq.s32.totalorder %s987_s22, 1  ;;  %p722_p7 = scmp.lt.s32.totalorder %s925_s21, 2 }
  0x41   : > { %s1092_s27 = scalar_select %p27_p6, %s921_s20, %s29_s29  }
  0x42   : > { %p1086_p5 = por %p1218_p3, %p36_p13  ;;  %p38_p9 = por %p37_p10, %p36_p13 }
  0x43   : > { %s208_s30 = sand.u32 1, %s921_s20   ;;  %s582_s6 = sshll.u32 %s925_s21, 7 }
  0x44   : > { %s1219_s23 = scalar_select %p1086_p5, 1, 0 }
  0x45   : > { %s581_s7 = sshll.u32 %s208_s30, 3  ;;  %s1099_s8 = scalar_lea.hbm %s1205_s0, %s582_s6 }
  0x46   : > { %s212_s9 = scalar_lea.vmem [#allocation2], %s581_s7  ;;  %p1103_p11 = pnand %p722_p7, %p38_p9 }
  0x47   : > { %s219_s10 = sshll.u32 %s212_s9, 4  ;;  %s209_s28 = scalar_lea.sflag [#allocation3], %s208_s30  ;;  %s1101_s10 = int_to_ptr.vmem [resolvable:$true] %s219_s10 }
  0x48   : > { %s825_s12 = scalar_lea.hbm %s1099_s8, 128  ;;  %p827_p0 = pneg %p1103_p11 }
  0x49   : > { %p826_p12 = scmp.ne.s32.totalorder %s1099_s8, %s825_s12  ;;  %s830_s17 = scalar_lea.hbm %s1205_s0, 256 }
  0x4a   : > { %p831_p13 = scmp.lt.u32.totalorder %s1099_s8, %s1205_s0  ;;  %p832_p6 = scmp.lt.u32.totalorder %s830_s17, %s825_s12 }
  0x4b   : > { %p828_p2 = pnand %p827_p0, %p826_p12  ;;  %p834_p3 = scmp.lt.u32.totalorder %s825_s12, %s1099_s8 }
  0x4c   : > { %p833_p10 = por %p832_p6, %p831_p13 }
  0x4d   : > { %p829_p1 = pneg %p828_p2 }
  0x4e   : > { %p835_p7 = por %p834_p3, %p833_p10 }
  0x50   : > { %p836_p9 = pnand %p835_p7, %p829_p1 }
  0x52   : > { %839 = shalt.err (!%p836_p9)
}
  0x53   : > { %s840_s30 = scalar_lea.vmem %s1101_s10, 128  ;;  %s931_s15 = smov [#allocation2]  }
  0x54   : > { %p841_p12 = scmp.ne.s32.totalorder %s1101_s10, %s840_s30  ;;  %s845_s16 = sshll.u32 %s931_s15, 4  ;;  %s846_s16 = int_to_ptr.vmem [resolvable:$false] %s845_s16 }
  0x55   : > { %s847_s9 = scalar_lea.vmem %s846_s16, 256  ;;  %p848_p4 = scmp.lt.s32.totalorder %s1101_s10, %s846_s16 }
  0x56   : > { %p843_p2 = pnand %p841_p12, %p827_p0  ;;  %p849_p13 = scmp.lt.s32.totalorder %s847_s9, %s840_s30 }
  0x58   : > { %p844_p5 = pneg %p843_p2  ;;  %p850_p6 = por %p849_p13, %p848_p4 }
  0x5a   : > { %p851_p10 = pnand %p850_p6, %p844_p5 }
  0x5c   : > { %854 = shalt.err (!%p851_p10)
}
  0x5d   : > { %715 = dma.hbm_to_vmem [thread:$0]  (!%p1103_p11), %s1099_s8, 128, %s1101_s10, %s209_s28  }
  0x5e   : > { %228 = sbr.rel (%p1006_p8) target bundleno = 601 (0x259), region = 40  ;;  %s1135_s12 = sand.u32 (!%p1006_p8), 1, %s917_s19  }
  0x5f   : > { %s584_s13 = sshll.u32 (!%p1006_p8), %s1135_s12, 3  ;;  %s231_s29 = scalar_lea.sflag (!%p1006_p8), [#allocation3], %s1135_s12 }
  0x60   : > { %s234_s17 = scalar_lea.vmem (!%p1006_p8), [#allocation2], %s584_s13  ;;  %p1221_p4 = scmp.ne.s32.totalorder (!%p1006_p8), %s1214_s24, 0 }
  0x65   : > { %900 = dma.done.wait (%p1221_p4), %s231_s29, 128  }
  0x66   : > { %902 = vsyncadd (%p1221_p4), %s231_s29, 4294967168  ;;  %p1222_p5 = scmp.eq.s32.totalorder %s987_s22, 0 }
  0x68   : > { %904 = dma.done.wait (%p1222_p5), [#allocation6], 2560   ;;  %p1223_p8 = pmov %p1222_p5 }
  0x69   : > { %v932_v0 = vmov 0.0|0.0   ;;  %vm933_vm0 = vmmov 0   ;;  %v934_v1 = vmov 0.0   ;;  %v270_v2 = vld [vmem:[#allocation5] sm:$0xff]  ;;  %v271_v3 = vld [vmem:[#allocation5 + $0x8] sm:$0xff]  ;;  %v272_v4 = vld [vmem:[#allocation5 + $0x10] sm:$0xff] }
  0x6a   : > { %906 = vsyncadd (%p1223_p8), [#allocation6], 4294964736  ;;  %663 = vmatprep.subr.bf16.mxu0 %v932_v0  ;;  %625 = vmatprep.mubr.msk.f32.mxu0 %vm933_vm0, %v934_v1  ;;  %v664_v5 = vpack.c.bf16 %v271_v3, %v270_v2  ;;  %v273_v6 = vld [vmem:[#allocation5 + $0x18] sm:$0xff]  ;;  %vm281_vm1 = vcmask 261120   ;;  %v379_v9 = vld [vmem:[#allocation7] sm:$0xff]  ;;  %s592_s11 = sshll.u32 %s987_s22, 7 }
  0x6b   : > { %669 = vmatprep.subr.bf16.mxu1 %v932_v0  ;;  %660 = vmatprep.mubr.msk.f32.mxu1 %vm933_vm0, %v934_v1  ;;  %v667_v7 = vpack.c.bf16 %v273_v6, %v272_v4  ;;  %v269_v8 = vld [vmem:[%s234_s17] sm:$0xff]  ;;  %v380_v10 = vld [vmem:[#allocation7 + $0x8] sm:$0xff]  ;;  %v383_v15 = vld [vmem:[#allocation7 + $0x20] sm:$0xff]  ;;  %s268_s28 = scalar_lea.vmem [#allocation8], %s584_s13  ;;  %s1161_s15 = scalar_lea.hbm %s1210_s5, %s592_s11 }
  0x6c   : > { %665 = vmatpush3.bf16.msra.mxu0 %v664_v5  ;;  %v381_v11 = vld [vmem:[#allocation7 + $0x10] sm:$0xff]  ;;  %v670_v12 = vpack.c.bf16 %v380_v10, %v379_v9  ;;  %v382_v13 = vld [vmem:[#allocation7 + $0x18] sm:$0xff]  ;;  %v384_v16 = vld [vmem:[#allocation7 + $0x28] sm:$0xff]  ;;  %s487_s7 = sshll.u32 %s268_s28, 4  ;;  %s474_s16 = scalar_lea.sflag [#allocation4], %s1135_s12  ;;  %s1163_s7 = int_to_ptr.vmem [resolvable:$true] %s487_s7 }
  0x6d   : > { %666 = vmatprep.subr.bf16.mxu0 %v932_v0  ;;  %v673_v14 = vpack.c.bf16 %v382_v13, %v381_v11  ;;  %v676_v17 = vpack.c.bf16 %v384_v16, %v383_v15  ;;  %v385_v18 = vld [vmem:[#allocation7 + $0x30] sm:$0xff]  ;;  %v386_v19 = vld [vmem:[#allocation7 + $0x38] sm:$0xff]  ;;  %v387_v21 = vld [vmem:[#allocation7 + $0x40] sm:$0xff]  ;;  %s855_s9 = scalar_lea.vmem %s1163_s7, 128  ;;  %p1224_p0 = scmp.ne.s32.totalorder %s1219_s23, 0 }
  0x6e   : > { %671 = vmatpush3.bf16.msra.mxu1 %v670_v12  ;;  %v679_v20 = vpack.c.bf16 %v386_v19, %v385_v18  ;;  %v388_v22 = vld [vmem:[#allocation7 + $0x48] sm:$0xff]  ;;  %v389_v24 = vld [vmem:[#allocation7 + $0x50] sm:$0xff]  ;;  %v390_v25 = vld [vmem:[#allocation7 + $0x58] sm:$0xff]  ;;  %p856_p11 = scmp.ne.s32.totalorder %s1163_s7, %s855_s9  ;;  %s935_s22 = smov [#allocation8]  }
  0x6f   : > { %672 = vmatprep.subr.bf16.mxu1 %v932_v0  ;;  %v682_v23 = vpack.c.bf16 %v388_v22, %v387_v21  ;;  %v685_v26 = vpack.c.bf16 %v390_v25, %v389_v24  ;;  %v391_v27 = vld [vmem:[#allocation7 + $0x60] sm:$0xff]  ;;  %v392_v28 = vld [vmem:[#allocation7 + $0x68] sm:$0xff]  ;;  %v393_v30 = vld [vmem:[#allocation7 + $0x70] sm:$0xff]  ;;  %s859_s13 = sshll.u32 %s935_s22, 4  ;;  %s860_s13 = int_to_ptr.vmem [resolvable:$false] %s859_s13 }
  0x70   : > { %668 = vmatpush3.bf16.msra.mxu0 %v667_v7  ;;  %v688_v29 = vpack.c.bf16 %v392_v28, %v391_v27  ;;  %v394_v31 = vld [vmem:[#allocation7 + $0x78] sm:$0xff]  ;;  %v588_v33 = vld [vmem:[%s1207_s2] ss:$0 sm:$0xff]  ;;  %p857_p1 = pnand %p856_p11, %p1224_p0  ;;  %s861_s29 = scalar_lea.vmem %s860_s13, 256 }
  0x71   : > { %v691_v32 = vpack.c.bf16 %v394_v31, %v393_v30  ;;  %v590_v60 = vld [vmem:[%s1209_s4] ss:$0 sm:$0xff]  ;;  %p862_p7 = scmp.lt.s32.totalorder %s1163_s7, %s860_s13  ;;  %p863_p9 = scmp.lt.s32.totalorder %s861_s29, %s855_s9 }
  0x72   : > { %674 = vmatpush3.bf16.msra.mxu1 %v673_v14  ;;  %p858_p3 = pneg %p857_p1 }
  0x73   : > { %626 = vmatmul.mubr.msk.f32.vlgmr.msra.gmra.mrb[0].mxu0 %vm281_vm1, %v269_v8  ;;  %675 = vmatprep.subr.bf16.mxu1 %v932_v0  ;;  %p864_p12 = por %p863_p9, %p862_p7 }
  0x75   : > { %p865_p2 = pnand %p864_p12, %p858_p3 }
  0x76   : > { %677 = vmatpush3.bf16.msra.mxu1 %v676_v17 }
  0x77   : > { %678 = vmatprep.subr.bf16.mxu1 %v932_v0 }
  0x7a   : > { %680 = vmatpush3.bf16.msra.mxu1 %v679_v20 }
  0x7b   : > { %681 = vmatprep.subr.bf16.mxu1 %v932_v0 }
  0x7e   : > { %683 = vmatpush3.bf16.msra.mxu1 %v682_v23 }
  0x7f   : > { %684 = vmatprep.subr.bf16.mxu1 %v932_v0 }
  0x82   : > { %686 = vmatpush3.bf16.msra.mxu1 %v685_v26 }
  0x83   : > { %687 = vmatprep.subr.bf16.mxu1 %v932_v0 }
  0x86   : > { %689 = vmatpush3.bf16.msra.mxu1 %v688_v29 }
  0x87   : > { %690 = vmatprep.subr.bf16.mxu1 %v932_v0 }
  0x8a   : > { %692 = vmatpush3.bf16.msra.mxu1 %v691_v32 }
 0x146   : > { %v351_v34 = vpop.f32.mrb[0].mxu0 }
 0x147   : > { %v352_v35 = vadd.f32 %v588_v33, %v351_v34  ;;  %v627_v36 = vpop.f32.mrb[1].mxu0 }
 0x149   : > { %v355_v37 = vmul.f32 0.70710677, %v352_v35  ;;  %v377_v57 = vmul.f32 0.5, %v352_v35 }
 0x14b   : > { %v356_v38 = vand.u32 2147483647, %v355_v37  ;;  %vm374_vm2 = vcmp.ge.f32.partialorder %v355_v37, 0.0 }
 0x14d   : > { %v357_v39 = vmul.f32 0.3275911, %v356_v38  ;;  %v369_v41 = vsub.f32 0.0, %v356_v38 }
 0x14f   : > { %v358_v40 = vadd.f32 1.0, %v357_v39  ;;  %v370_v43 = vmul.f32 %v369_v41, %v356_v38 }
 0x151   : > { %765 = vrcp.f32 %v358_v40  ;;  %v371_v46 = vmul.f32 1.442695, %v370_v43 }
 0x153   : > { %767 = vpow2.f32 %v371_v46 }
 0x15b   : > { %v766_v42 = vpop.eup %765 }
 0x15c   : > { %v360_v44 = vmul.f32 1.0614054, %v766_v42 }
 0x15d   : > { %v768_v54 = vpop.eup %767 }
 0x15e   : > { %v361_v45 = vadd.f32 -1.4531521, %v360_v44 }
 0x160   : > { %v362_v47 = vmul.f32 %v766_v42, %v361_v45 }
 0x162   : > { %v363_v48 = vadd.f32 1.4214138, %v362_v47 }
 0x164   : > { %v364_v49 = vmul.f32 %v766_v42, %v363_v48 }
 0x166   : > { %v365_v50 = vadd.f32 -0.28449672, %v364_v49 }
 0x168   : > { %v366_v51 = vmul.f32 %v766_v42, %v365_v50 }
 0x16a   : > { %v367_v52 = vadd.f32 0.2548296, %v366_v51 }
 0x16c   : > { %v368_v53 = vmul.f32 %v766_v42, %v367_v52 }
 0x16e   : > { %v373_v55 = vmul.f32 %v768_v54, %v368_v53 }
 0x170   : > { %v375_v56 = vsub.f32 2.0, %v373_v55 }
 0x172   : > { %v376_v58 = vsel %vm374_vm2, %v375_v56, %v373_v55 }
 0x173   : > { %v378_v59 = vmul.f32 %v377_v57, %v376_v58 }
 0x175   : > { %661 = vmatmul.mubr.f32.vlgmr.msra.gmra.mrb[0].mxu1 %v378_v59 }
 0x248   : > { %v468_v61 = vpop.f32.mrb[0].mxu1 }
 0x249   : > { %v469_v62 = vadd.f32 %v590_v60, %v468_v61  ;;  %v662_v63 = vpop.f32.mrb[1].mxu1 }
 0x24b   : > { %472 = vst [vmem:[%s268_s28] sm:$0xff] %v469_v62 }
 0x24c   : > { %868 = shalt.err (!%p865_p2)
}
 0x24d   : > { %s869_s12 = scalar_lea.hbm %s1161_s15, 128  ;;  %s873_s26 = scalar_lea.hbm %s1210_s5, 256 }
 0x24e   : > { %p870_p13 = scmp.ne.s32.totalorder %s1161_s15, %s869_s12  ;;  %p874_p4 = scmp.lt.u32.totalorder %s1161_s15, %s1210_s5 }
 0x24f   : > { %p875_p5 = scmp.lt.u32.totalorder %s873_s26, %s869_s12  ;;  %p877_p11 = scmp.lt.u32.totalorder %s869_s12, %s1161_s15 }
 0x250   : > { %p871_p6 = pnand %p870_p13, %p1224_p0 }
 0x251   : > { %p876_p8 = por %p875_p5, %p874_p4 }
 0x252   : > { %p872_p10 = pneg %p871_p6 }
 0x253   : > { %p878_p1 = por %p877_p11, %p876_p8 }
 0x255   : > { %p879_p3 = pnand %p878_p1, %p872_p10 }
 0x257   : > { %882 = shalt.err (!%p879_p3)
}
 0x258   : > { %703 = dma.vmem_to_hbm [thread:$0]  (%p1224_p0), %s1163_s7, 128, %s1161_s15, %s474_s16  }
 0x259 PF: > { %s499_s11 = sand.u32 1, %s913_s18   ;;  %p1225_p7 = scmp.ne.s32.totalorder %s1215_s25, 0 }
 0x25a   : > { %p1226_p9 = scmp.ge.s32.totalorder %s925_s21, 2  ;;  %s500_s28 = scalar_lea.sflag [#allocation4], %s499_s11 }
 0x25c   : > { %p717_p12 = pnand %p1226_p9, %p1225_p7 }
 0x25e   : > { %908 = dma.done.wait (!%p717_p12), %s500_s28, 128  }
 0x25f   : > { %910 = vsyncadd (!%p717_p12), %s500_s28, 4294967168  ;;  %p19_p2 = scmp.ge.s32.totalorder %s1076_s14, 4   ;;  %s1227_s18 = smov %s917_s19 }
 0x260   : > { %s1228_s19 = smov %s921_s20  ;;  %s1229_s20 = smov %s1092_s27 }
 0x261   : > { %s1230_s21 = smov %s1076_s14  ;;  %21 = sbr.rel (!%p19_p2) target bundleno = 6 (0x6), region = 93 }
 0x268   :  { %505 = vsyncpa [#allocation3], 1 }
 0x269   :  { %507 = vsyncpa [#allocation3 + $0x1], 1 }
 0x26a   :  { %508 = vsyncpa [#allocation6], 1 }
 0x26b   :  { %509 = vsyncpa [#allocation4], 1 }
 0x26c   :  { %511 = vsyncpa [#allocation4 + $0x1], 1 }

</bundles_post_ra>
